<compile_context>
chip_gen: v5e
topology: v5e:2x2
jax: 0.10.0
libtpu: 0.0.40
codegen_flags: <defaults>
</compile_context>

<pallas_src>
import functools

import jax
import jax.numpy as jnp
from jax.experimental import pallas as pl
from jax.experimental.pallas import tpu as pltpu

SENSOR_DIM = 8
ACTION_DIM = 3
HIDDEN_DIM = 128
H2 = HIDDEN_DIM // 2      # 64
H4 = HIDDEN_DIM // 4      # 32

_TB_MAX = 1024            # rows per grid step (multiple of 8 for f32 sublanes)
_BF16 = jnp.bfloat16


def _round_up(x, m):
    return ((x + m - 1) // m) * m


# ---------------------------------------------------------------------------
# Kernels
# ---------------------------------------------------------------------------
def _predict_kernel(s_ref, a_ref,
                    w1_ref, b1_ref, w2_ref, b2_ref,          # sensor encoder
                    wa_ref, ba_ref,                          # action encoder
                    wp1s_ref, wp1a_ref, bp1_ref,             # predictor L1 (pre-split)
                    wp2_ref, bp2_ref,                        # predictor L2
                    wp3_ref, bp3_ref,                        # predictor L3
                    out_ref):
    # bf16 MXU operands, f32 accumulation, f32 elementwise.
    x = s_ref[...].astype(_BF16)
    a = a_ref[...].astype(_BF16)

    # sensor_encoder: Linear(8,128) -> ReLU -> Linear(128,64)
    h = jnp.dot(x, w1_ref[...], preferred_element_type=jnp.float32) + b1_ref[...]
    h = jnp.maximum(h, 0.0).astype(_BF16)
    sf = jnp.dot(h, w2_ref[...], preferred_element_type=jnp.float32) + b2_ref[...]
    sf = sf.astype(_BF16)

    # action_encoder: Linear(3,32) -> ReLU
    af = jnp.dot(a, wa_ref[...], preferred_element_type=jnp.float32) + ba_ref[...]
    af = jnp.maximum(af, 0.0).astype(_BF16)

    # predictor: Linear(96,128) -> ReLU -> Linear(128,128) -> ReLU -> Linear(128,8)
    # concat([sf, af]) @ Wp1 == sf @ Wp1[:64] + af @ Wp1[64:]  (exact)
    p = (jnp.dot(sf, wp1s_ref[...], preferred_element_type=jnp.float32)
         + jnp.dot(af, wp1a_ref[...], preferred_element_type=jnp.float32)
         + bp1_ref[...])
    p = jnp.maximum(p, 0.0).astype(_BF16)
    p = jnp.dot(p, wp2_ref[...], preferred_element_type=jnp.float32) + bp2_ref[...]
    p = jnp.maximum(p, 0.0).astype(_BF16)
    out = jnp.dot(p, wp3_ref[...], preferred_element_type=jnp.float32) + bp3_ref[...]
    out_ref[...] = out.astype(out_ref.dtype)


def _motor_kernel(s_ref,
                  w1_ref, b1_ref, w2_ref, b2_ref,            # sensor encoder
                  wm1_ref, bm1_ref, wm2_ref, bm2_ref,        # motor network
                  out_ref):
    x = s_ref[...].astype(_BF16)

    # sensor_encoder
    h = jnp.dot(x, w1_ref[...], preferred_element_type=jnp.float32) + b1_ref[...]
    h = jnp.maximum(h, 0.0).astype(_BF16)
    sf = jnp.dot(h, w2_ref[...], preferred_element_type=jnp.float32) + b2_ref[...]
    sf = sf.astype(_BF16)

    # motor_network: Linear(64,64) -> ReLU -> Linear(64,3) -> Tanh (tanh in f32)
    m = jnp.dot(sf, wm1_ref[...], preferred_element_type=jnp.float32) + bm1_ref[...]
    m = jnp.maximum(m, 0.0).astype(_BF16)
    m = jnp.dot(m, wm2_ref[...], preferred_element_type=jnp.float32) + bm2_ref[...]
    out_ref[...] = jnp.tanh(m).astype(out_ref.dtype)


# ---------------------------------------------------------------------------
# Specs / compiler params
# ---------------------------------------------------------------------------
def _row_spec(tb, feat):
    # Batch-tiled activation / output block.
    return pl.BlockSpec((tb, feat), lambda i: (i, 0))


def _weight_spec(shape):
    # Constant block index -> weight stays VMEM-resident across grid steps.
    return pl.BlockSpec(shape, lambda i: (0, 0))


_COMPILER_PARAMS = pltpu.CompilerParams(
    dimension_semantics=("parallel",),      # v7x: shard batch tiles over 2 TCs
    vmem_limit_bytes=32 * 1024 * 1024,      # safe on v5e/v6e/v7x
)


def _nbytes(arrs):
    return sum(int(a.size) * a.dtype.itemsize for a in arrs)


# ---------------------------------------------------------------------------
# Parameter init (shapes match the PyTorch module)
# ---------------------------------------------------------------------------
def _init_params(key):
    """Returns (kernel_params, ref_params).

    kernel_params: weights pre-transposed to (in, out), pre-cast to bf16, and
    the predictor-L1 weight pre-split into sensor/action halves; biases f32.
    ref_params: plain f32 copies matching the PyTorch module semantics.
    """
    def linear(k, fan_in, fan_out):
        kw, kb = jax.random.split(k)
        bound = 1.0 / jnp.sqrt(fan_in)
        w = jax.random.uniform(kw, (fan_in, fan_out), jnp.float32, -bound, bound)
        b = jax.random.uniform(kb, (1, fan_out), jnp.float32, -bound, bound)
        return w, b

    ks = jax.random.split(key, 8)
    se1_w, se1_b = linear(ks[0], SENSOR_DIM, HIDDEN_DIM)
    se2_w, se2_b = linear(ks[1], HIDDEN_DIM, H2)
    ae_w,  ae_b  = linear(ks[2], ACTION_DIM, H4)
    p1_w,  p1_b  = linear(ks[3], H2 + H4, HIDDEN_DIM)
    p2_w,  p2_b  = linear(ks[4], HIDDEN_DIM, HIDDEN_DIM)
    p3_w,  p3_b  = linear(ks[5], HIDDEN_DIM, SENSOR_DIM)
    m1_w,  m1_b  = linear(ks[6], H2, H2)
    m2_w,  m2_b  = linear(ks[7], H2, ACTION_DIM)

    kernel_params = {
        "se1_w": se1_w.astype(_BF16), "se1_b": se1_b,
        "se2_w": se2_w.astype(_BF16), "se2_b": se2_b,
        "ae_w":  ae_w.astype(_BF16),  "ae_b":  ae_b,
        "p1s_w": p1_w[:H2, :].astype(_BF16),   # sensor half of concat matmul
        "p1a_w": p1_w[H2:, :].astype(_BF16),   # action half of concat matmul
        "p1_b":  p1_b,
        "p2_w":  p2_w.astype(_BF16), "p2_b": p2_b,
        "p3_w":  p3_w.astype(_BF16), "p3_b": p3_b,
        "m1_w":  m1_w.astype(_BF16), "m1_b": m1_b,
        "m2_w":  m2_w.astype(_BF16), "m2_b": m2_b,
    }
    ref_params = {
        "se1_w": se1_w, "se1_b": se1_b, "se2_w": se2_w, "se2_b": se2_b,
        "ae_w": ae_w, "ae_b": ae_b, "p1_w": p1_w, "p1_b": p1_b,
        "p2_w": p2_w, "p2_b": p2_b, "p3_w": p3_w, "p3_b": p3_b,
        "m1_w": m1_w, "m1_b": m1_b, "m2_w": m2_w, "m2_b": m2_b,
    }
    return kernel_params, ref_params


# ---------------------------------------------------------------------------
# Forward wrappers
# ---------------------------------------------------------------------------
@functools.partial(jax.jit)
def prediction_forward(params, sensor_input, action_input):
    """Forward with action_input -> predicted sensors, shape (B, SENSOR_DIM)."""
    B = sensor_input.shape[0]
    TB = min(_TB_MAX, _round_up(B, 8))
    grid = (pl.cdiv(B, TB),)

    weights = (params["se1_w"], params["se1_b"], params["se2_w"], params["se2_b"],
               params["ae_w"], params["ae_b"],
               params["p1s_w"], params["p1a_w"], params["p1_b"],
               params["p2_w"], params["p2_b"],
               params["p3_w"], params["p3_b"])

    flops = 2 * B * (SENSOR_DIM * HIDDEN_DIM + HIDDEN_DIM * H2 + ACTION_DIM * H4
                     + H2 * HIDDEN_DIM + H4 * HIDDEN_DIM
                     + HIDDEN_DIM * HIDDEN_DIM + HIDDEN_DIM * SENSOR_DIM)
    bytes_accessed = (B * (SENSOR_DIM + ACTION_DIM + SENSOR_DIM) * 4
                      + _nbytes(weights))

    in_specs = ([_row_spec(TB, SENSOR_DIM), _row_spec(TB, ACTION_DIM)]
                + [_weight_spec(w.shape) for w in weights])

    return pl.pallas_call(
        _predict_kernel,
        out_shape=jax.ShapeDtypeStruct((B, SENSOR_DIM), jnp.float32),
        grid=grid,
        in_specs=in_specs,
        out_specs=_row_spec(TB, SENSOR_DIM),
        compiler_params=_COMPILER_PARAMS,
        cost_estimate=pl.CostEstimate(flops=flops, transcendentals=0,
                                      bytes_accessed=bytes_accessed),
    )(sensor_input, action_input, *weights)


@functools.partial(jax.jit)
def motor_forward(params, sensor_input):
    """Forward without action_input -> motor output, shape (B, ACTION_DIM)."""
    B = sensor_input.shape[0]
    TB = min(_TB_MAX, _round_up(B, 8))
    grid = (pl.cdiv(B, TB),)

    weights = (params["se1_w"], params["se1_b"], params["se2_w"], params["se2_b"],
               params["m1_w"], params["m1_b"], params["m2_w"], params["m2_b"])

    flops = 2 * B * (SENSOR_DIM * HIDDEN_DIM + HIDDEN_DIM * H2
                     + H2 * H2 + H2 * ACTION_DIM)
    bytes_accessed = (B * (SENSOR_DIM + ACTION_DIM) * 4 + _nbytes(weights))

    in_specs = ([_row_spec(TB, SENSOR_DIM)]
                + [_weight_spec(w.shape) for w in weights])

    return pl.pallas_call(
        _motor_kernel,
        out_shape=jax.ShapeDtypeStruct((B, ACTION_DIM), jnp.float32),
        grid=grid,
        in_specs=in_specs,
        out_specs=_row_spec(TB, ACTION_DIM),
        compiler_params=_COMPILER_PARAMS,
        cost_estimate=pl.CostEstimate(flops=flops,
                                      transcendentals=B * ACTION_DIM,
                                      bytes_accessed=bytes_accessed),
    )(sensor_input, *weights)


# ---------------------------------------------------------------------------
# Pure-JAX f32 reference (the PyTorch-module semantics)
# ---------------------------------------------------------------------------
def _ref_prediction(p, s, a):
    h = jax.nn.relu(s @ p["se1_w"] + p["se1_b"])
    sf = h @ p["se2_w"] + p["se2_b"]
    af = jax.nn.relu(a @ p["ae_w"] + p["ae_b"])
    c = jnp.concatenate([sf, af], axis=-1)
    x = jax.nn.relu(c @ p["p1_w"] + p["p1_b"])
    x = jax.nn.relu(x @ p["p2_w"] + p["p2_b"])
    return x @ p["p3_w"] + p["p3_b"]


def _ref_motor(p, s):
    h = jax.nn.relu(s @ p["se1_w"] + p["se1_b"])
    sf = h @ p["se2_w"] + p["se2_b"]
    m = jax.nn.relu(sf @ p["m1_w"] + p["m1_b"])
    return jnp.tanh(m @ p["m2_w"] + p["m2_b"])


if __name__ == "__main__":
    key = jax.random.PRNGKey(0)
    kp, ks, ka = jax.random.split(key, 3)

    params, ref_params = _init_params(kp)
    batch = 64
    sensor = jax.random.normal(ks, (batch, SENSOR_DIM), jnp.float32)
    action = jax.random.normal(ka, (batch, ACTION_DIM), jnp.float32)

    pred = jax.block_until_ready(prediction_forward(params, sensor, action))
    motor = jax.block_until_ready(motor_forward(params, sensor))

    assert pred.shape == (batch, SENSOR_DIM)
    assert motor.shape == (batch, ACTION_DIM)

    # bf16 matmul operands vs f32 reference -> loose-but-tight-enough tolerance.
    ref_pred = _ref_prediction(ref_params, sensor, action)
    ref_motor = _ref_motor(ref_params, sensor)
    assert jnp.allclose(pred, ref_pred, atol=5e-2, rtol=5e-2), (
        float(jnp.max(jnp.abs(pred - ref_pred))))
    assert jnp.allclose(motor, ref_motor, atol=5e-2, rtol=5e-2), (
        float(jnp.max(jnp.abs(motor - ref_motor))))

    print("KERNEL_OK")
</pallas_src>

<mosaic_0001>
module attributes {stable_mosaic.version = 11 : i64} {
  func.func @_predict_kernel(%arg0: i32, %arg1: memref<64x8xf32, #tpu.memory_space<vmem>>, %arg2: memref<64x3xf32, #tpu.memory_space<vmem>>, %arg3: memref<8x128xbf16, #tpu.memory_space<vmem>>, %arg4: memref<1x128xf32, #tpu.memory_space<vmem>>, %arg5: memref<128x64xbf16, #tpu.memory_space<vmem>>, %arg6: memref<1x64xf32, #tpu.memory_space<vmem>>, %arg7: memref<3x32xbf16, #tpu.memory_space<vmem>>, %arg8: memref<1x32xf32, #tpu.memory_space<vmem>>, %arg9: memref<64x128xbf16, #tpu.memory_space<vmem>>, %arg10: memref<32x128xbf16, #tpu.memory_space<vmem>>, %arg11: memref<1x128xf32, #tpu.memory_space<vmem>>, %arg12: memref<128x128xbf16, #tpu.memory_space<vmem>>, %arg13: memref<1x128xf32, #tpu.memory_space<vmem>>, %arg14: memref<128x8xbf16, #tpu.memory_space<vmem>>, %arg15: memref<1x8xf32, #tpu.memory_space<vmem>>, %arg16: memref<64x8xf32, #tpu.memory_space<vmem>>) attributes {dimension_semantics = [#tpu.dimension_semantics<parallel>], iteration_bounds = array<i64: 1>, scalar_prefetch = 0 : i64, scratch_operands = 0 : i64, tpu.core_type = #tpu.core_type<tc>, window_params = [{transform_indices = @transform_0, window_bounds = array<i64: 64, 8>}, {transform_indices = @transform_1, window_bounds = array<i64: 64, 3>}, {pipeline_mode = #tpu.pipeline_mode<synchronous>, transform_indices = @transform_2, window_bounds = array<i64: 8, 128>}, {pipeline_mode = #tpu.pipeline_mode<synchronous>, transform_indices = @transform_3, window_bounds = array<i64: 1, 128>}, {pipeline_mode = #tpu.pipeline_mode<synchronous>, transform_indices = @transform_4, window_bounds = array<i64: 128, 64>}, {pipeline_mode = #tpu.pipeline_mode<synchronous>, transform_indices = @transform_5, window_bounds = array<i64: 1, 64>}, {pipeline_mode = #tpu.pipeline_mode<synchronous>, transform_indices = @transform_6, window_bounds = array<i64: 3, 32>}, {pipeline_mode = #tpu.pipeline_mode<synchronous>, transform_indices = @transform_7, window_bounds = array<i64: 1, 32>}, {pipeline_mode = #tpu.pipeline_mode<synchronous>, transform_indices = @transform_8, window_bounds = array<i64: 64, 128>}, {pipeline_mode = #tpu.pipeline_mode<synchronous>, transform_indices = @transform_9, window_bounds = array<i64: 32, 128>}, {pipeline_mode = #tpu.pipeline_mode<synchronous>, transform_indices = @transform_10, window_bounds = array<i64: 1, 128>}, {pipeline_mode = #tpu.pipeline_mode<synchronous>, transform_indices = @transform_11, window_bounds = array<i64: 128, 128>}, {pipeline_mode = #tpu.pipeline_mode<synchronous>, transform_indices = @transform_12, window_bounds = array<i64: 1, 128>}, {pipeline_mode = #tpu.pipeline_mode<synchronous>, transform_indices = @transform_13, window_bounds = array<i64: 128, 8>}, {pipeline_mode = #tpu.pipeline_mode<synchronous>, transform_indices = @transform_14, window_bounds = array<i64: 1, 8>}, {transform_indices = @transform_15, window_bounds = array<i64: 64, 8>}]} {
    %c0 = arith.constant 0 : index
    %c0_0 = arith.constant 0 : index
    %0 = vector.load %arg1[%c0, %c0_0] : memref<64x8xf32, #tpu.memory_space<vmem>>, vector<64x8xf32>
    %1 = arith.truncf %0 : vector<64x8xf32> to vector<64x8xbf16>
    %c0_1 = arith.constant 0 : index
    %c0_2 = arith.constant 0 : index
    %2 = vector.load %arg2[%c0_1, %c0_2] : memref<64x3xf32, #tpu.memory_space<vmem>>, vector<64x3xf32>
    %3 = arith.truncf %2 : vector<64x3xf32> to vector<64x3xbf16>
    %c0_3 = arith.constant 0 : index
    %c0_4 = arith.constant 0 : index
    %4 = vector.load %arg3[%c0_3, %c0_4] : memref<8x128xbf16, #tpu.memory_space<vmem>>, vector<8x128xbf16>
    %cst = arith.constant dense<0.000000e+00> : vector<64x128xf32>
    %5 = tpu.matmul %1, %4, %cst {dimension_numbers = #tpu.dot_dimension_numbers<[1], [0], [0], [1], [0, 0, 1, 1], [], []>} : vector<64x8xbf16>, vector<8x128xbf16>, vector<64x128xf32> -> vector<64x128xf32>
    %c0_5 = arith.constant 0 : index
    %c0_6 = arith.constant 0 : index
    %6 = vector.load %arg4[%c0_5, %c0_6] : memref<1x128xf32, #tpu.memory_space<vmem>>, vector<1x128xf32>
    %7 = vector.broadcast %6 : vector<1x128xf32> to vector<64x128xf32>
    %8 = arith.addf %5, %7 : vector<64x128xf32>
    %cst_7 = arith.constant 0.000000e+00 : f32
    %9 = vector.broadcast %cst_7 : f32 to vector<64x128xf32>
    %10 = arith.maximumf %8, %9 : vector<64x128xf32>
    %11 = arith.truncf %10 : vector<64x128xf32> to vector<64x128xbf16>
    %c0_8 = arith.constant 0 : index
    %c0_9 = arith.constant 0 : index
    %12 = vector.load %arg5[%c0_8, %c0_9] : memref<128x64xbf16, #tpu.memory_space<vmem>>, vector<128x64xbf16>
    %cst_10 = arith.constant dense<0.000000e+00> : vector<64x64xf32>
    %13 = tpu.matmul %11, %12, %cst_10 {dimension_numbers = #tpu.dot_dimension_numbers<[1], [0], [0], [1], [0, 0, 1, 1], [], []>} : vector<64x128xbf16>, vector<128x64xbf16>, vector<64x64xf32> -> vector<64x64xf32>
    %c0_11 = arith.constant 0 : index
    %c0_12 = arith.constant 0 : index
    %14 = vector.load %arg6[%c0_11, %c0_12] : memref<1x64xf32, #tpu.memory_space<vmem>>, vector<1x64xf32>
    %15 = vector.broadcast %14 : vector<1x64xf32> to vector<64x64xf32>
    %16 = arith.addf %13, %15 : vector<64x64xf32>
    %17 = arith.truncf %16 : vector<64x64xf32> to vector<64x64xbf16>
    %c0_13 = arith.constant 0 : index
    %c0_14 = arith.constant 0 : index
    %18 = vector.load %arg7[%c0_13, %c0_14] : memref<3x32xbf16, #tpu.memory_space<vmem>>, vector<3x32xbf16>
    %cst_15 = arith.constant dense<0.000000e+00> : vector<64x32xf32>
    %19 = tpu.matmul %3, %18, %cst_15 {dimension_numbers = #tpu.dot_dimension_numbers<[1], [0], [0], [1], [0, 0, 1, 1], [], []>} : vector<64x3xbf16>, vector<3x32xbf16>, vector<64x32xf32> -> vector<64x32xf32>
    %c0_16 = arith.constant 0 : index
    %c0_17 = arith.constant 0 : index
    %20 = vector.load %arg8[%c0_16, %c0_17] : memref<1x32xf32, #tpu.memory_space<vmem>>, vector<1x32xf32>
    %21 = vector.broadcast %20 : vector<1x32xf32> to vector<64x32xf32>
    %22 = arith.addf %19, %21 : vector<64x32xf32>
    %cst_18 = arith.constant 0.000000e+00 : f32
    %23 = vector.broadcast %cst_18 : f32 to vector<64x32xf32>
    %24 = arith.maximumf %22, %23 : vector<64x32xf32>
    %25 = arith.truncf %24 : vector<64x32xf32> to vector<64x32xbf16>
    %c0_19 = arith.constant 0 : index
    %c0_20 = arith.constant 0 : index
    %26 = vector.load %arg9[%c0_19, %c0_20] : memref<64x128xbf16, #tpu.memory_space<vmem>>, vector<64x128xbf16>
    %cst_21 = arith.constant dense<0.000000e+00> : vector<64x128xf32>
    %27 = tpu.matmul %17, %26, %cst_21 {dimension_numbers = #tpu.dot_dimension_numbers<[1], [0], [0], [1], [0, 0, 1, 1], [], []>} : vector<64x64xbf16>, vector<64x128xbf16>, vector<64x128xf32> -> vector<64x128xf32>
    %c0_22 = arith.constant 0 : index
    %c0_23 = arith.constant 0 : index
    %28 = vector.load %arg10[%c0_22, %c0_23] : memref<32x128xbf16, #tpu.memory_space<vmem>>, vector<32x128xbf16>
    %cst_24 = arith.constant dense<0.000000e+00> : vector<64x128xf32>
    %29 = tpu.matmul %25, %28, %cst_24 {dimension_numbers = #tpu.dot_dimension_numbers<[1], [0], [0], [1], [0, 0, 1, 1], [], []>} : vector<64x32xbf16>, vector<32x128xbf16>, vector<64x128xf32> -> vector<64x128xf32>
    %30 = arith.addf %27, %29 : vector<64x128xf32>
    %c0_25 = arith.constant 0 : index
    %c0_26 = arith.constant 0 : index
    %31 = vector.load %arg11[%c0_25, %c0_26] : memref<1x128xf32, #tpu.memory_space<vmem>>, vector<1x128xf32>
    %32 = vector.broadcast %31 : vector<1x128xf32> to vector<64x128xf32>
    %33 = arith.addf %30, %32 : vector<64x128xf32>
    %cst_27 = arith.constant 0.000000e+00 : f32
    %34 = vector.broadcast %cst_27 : f32 to vector<64x128xf32>
    %35 = arith.maximumf %33, %34 : vector<64x128xf32>
    %36 = arith.truncf %35 : vector<64x128xf32> to vector<64x128xbf16>
    %c0_28 = arith.constant 0 : index
    %c0_29 = arith.constant 0 : index
    %37 = vector.load %arg12[%c0_28, %c0_29] : memref<128x128xbf16, #tpu.memory_space<vmem>>, vector<128x128xbf16>
    %cst_30 = arith.constant dense<0.000000e+00> : vector<64x128xf32>
    %38 = tpu.matmul %36, %37, %cst_30 {dimension_numbers = #tpu.dot_dimension_numbers<[1], [0], [0], [1], [0, 0, 1, 1], [], []>} : vector<64x128xbf16>, vector<128x128xbf16>, vector<64x128xf32> -> vector<64x128xf32>
    %c0_31 = arith.constant 0 : index
    %c0_32 = arith.constant 0 : index
    %39 = vector.load %arg13[%c0_31, %c0_32] : memref<1x128xf32, #tpu.memory_space<vmem>>, vector<1x128xf32>
    %40 = vector.broadcast %39 : vector<1x128xf32> to vector<64x128xf32>
    %41 = arith.addf %38, %40 : vector<64x128xf32>
    %cst_33 = arith.constant 0.000000e+00 : f32
    %42 = vector.broadcast %cst_33 : f32 to vector<64x128xf32>
    %43 = arith.maximumf %41, %42 : vector<64x128xf32>
    %44 = arith.truncf %43 : vector<64x128xf32> to vector<64x128xbf16>
    %c0_34 = arith.constant 0 : index
    %c0_35 = arith.constant 0 : index
    %45 = vector.load %arg14[%c0_34, %c0_35] : memref<128x8xbf16, #tpu.memory_space<vmem>>, vector<128x8xbf16>
    %cst_36 = arith.constant dense<0.000000e+00> : vector<64x8xf32>
    %46 = tpu.matmul %44, %45, %cst_36 {dimension_numbers = #tpu.dot_dimension_numbers<[1], [0], [0], [1], [0, 0, 1, 1], [], []>} : vector<64x128xbf16>, vector<128x8xbf16>, vector<64x8xf32> -> vector<64x8xf32>
    %c0_37 = arith.constant 0 : index
    %c0_38 = arith.constant 0 : index
    %47 = vector.load %arg15[%c0_37, %c0_38] : memref<1x8xf32, #tpu.memory_space<vmem>>, vector<1x8xf32>
    %48 = vector.broadcast %47 : vector<1x8xf32> to vector<64x8xf32>
    %49 = arith.addf %46, %48 : vector<64x8xf32>
    %c0_39 = arith.constant 0 : index
    %c0_40 = arith.constant 0 : index
    %50 = vector.load %arg16[%c0_39, %c0_40] : memref<64x8xf32, #tpu.memory_space<vmem>>, vector<64x8xf32>
    tpu.vector_store %arg16[%c0_39, %c0_40], %49 {strides = array<i32>} : memref<64x8xf32, #tpu.memory_space<vmem>>, vector<64x8xf32>,
    return
  }
  func.func @transform_0(%arg0: i32) -> (i32, i32) {
    %c0_i32 = arith.constant 0 : i32
    %c0_i32_0 = arith.constant 0 : i32
    return %arg0, %c0_i32 : i32, i32
  }
  func.func @transform_1(%arg0: i32) -> (i32, i32) {
    %c0_i32 = arith.constant 0 : i32
    %c0_i32_0 = arith.constant 0 : i32
    return %arg0, %c0_i32 : i32, i32
  }
  func.func @transform_2(%arg0: i32) -> (i32, i32) {
    %c0_i32 = arith.constant 0 : i32
    %c0_i32_0 = arith.constant 0 : i32
    %c0_i32_1 = arith.constant 0 : i32
    return %c0_i32, %c0_i32_0 : i32, i32
  }
  func.func @transform_3(%arg0: i32) -> (i32, i32) {
    %c0_i32 = arith.constant 0 : i32
    %c0_i32_0 = arith.constant 0 : i32
    %c0_i32_1 = arith.constant 0 : i32
    return %c0_i32, %c0_i32_0 : i32, i32
  }
  func.func @transform_4(%arg0: i32) -> (i32, i32) {
    %c0_i32 = arith.constant 0 : i32
    %c0_i32_0 = arith.constant 0 : i32
    %c0_i32_1 = arith.constant 0 : i32
    return %c0_i32, %c0_i32_0 : i32, i32
  }
  func.func @transform_5(%arg0: i32) -> (i32, i32) {
    %c0_i32 = arith.constant 0 : i32
    %c0_i32_0 = arith.constant 0 : i32
    %c0_i32_1 = arith.constant 0 : i32
    return %c0_i32, %c0_i32_0 : i32, i32
  }
  func.func @transform_6(%arg0: i32) -> (i32, i32) {
    %c0_i32 = arith.constant 0 : i32
    %c0_i32_0 = arith.constant 0 : i32
    %c0_i32_1 = arith.constant 0 : i32
    return %c0_i32, %c0_i32_0 : i32, i32
  }
  func.func @transform_7(%arg0: i32) -> (i32, i32) {
    %c0_i32 = arith.constant 0 : i32
    %c0_i32_0 = arith.constant 0 : i32
    %c0_i32_1 = arith.constant 0 : i32
    return %c0_i32, %c0_i32_0 : i32, i32
  }
  func.func @transform_8(%arg0: i32) -> (i32, i32) {
    %c0_i32 = arith.constant 0 : i32
    %c0_i32_0 = arith.constant 0 : i32
    %c0_i32_1 = arith.constant 0 : i32
    return %c0_i32, %c0_i32_0 : i32, i32
  }
  func.func @transform_9(%arg0: i32) -> (i32, i32) {
    %c0_i32 = arith.constant 0 : i32
    %c0_i32_0 = arith.constant 0 : i32
    %c0_i32_1 = arith.constant 0 : i32
    return %c0_i32, %c0_i32_0 : i32, i32
  }
  func.func @transform_10(%arg0: i32) -> (i32, i32) {
    %c0_i32 = arith.constant 0 : i32
    %c0_i32_0 = arith.constant 0 : i32
    %c0_i32_1 = arith.constant 0 : i32
    return %c0_i32, %c0_i32_0 : i32, i32
  }
  func.func @transform_11(%arg0: i32) -> (i32, i32) {
    %c0_i32 = arith.constant 0 : i32
    %c0_i32_0 = arith.constant 0 : i32
    %c0_i32_1 = arith.constant 0 : i32
    return %c0_i32, %c0_i32_0 : i32, i32
  }
  func.func @transform_12(%arg0: i32) -> (i32, i32) {
    %c0_i32 = arith.constant 0 : i32
    %c0_i32_0 = arith.constant 0 : i32
    %c0_i32_1 = arith.constant 0 : i32
    return %c0_i32, %c0_i32_0 : i32, i32
  }
  func.func @transform_13(%arg0: i32) -> (i32, i32) {
    %c0_i32 = arith.constant 0 : i32
    %c0_i32_0 = arith.constant 0 : i32
    %c0_i32_1 = arith.constant 0 : i32
    return %c0_i32, %c0_i32_0 : i32, i32
  }
  func.func @transform_14(%arg0: i32) -> (i32, i32) {
    %c0_i32 = arith.constant 0 : i32
    %c0_i32_0 = arith.constant 0 : i32
    %c0_i32_1 = arith.constant 0 : i32
    return %c0_i32, %c0_i32_0 : i32, i32
  }
  func.func @transform_15(%arg0: i32) -> (i32, i32) {
    %c0_i32 = arith.constant 0 : i32
    %c0_i32_0 = arith.constant 0 : i32
    return %arg0, %c0_i32 : i32, i32
  }
}

</mosaic_0001>

<bundles_post_ra>
// kernel: prediction_forward.1
= control target key start
LH: loop header
LB: loop body
LE: loop exit
PB: predicated region body
PF: predicated region fallthrough
CT: control target
= control target key end

     0   :  { %vm93_vm0 = vcmask 1043456   ;;  %vm80_vm1 = vcmask 64512   ;;  %vm257_vm2 = vcmask 1040384   ;;  %vm258_vm3 = vcmask 1041408   ;;  %s1145_s2 = inlined_call_operand.vmem [shape: bf16[8,128], index: 2, kind: input, shape index: {}]   ;;  %s1146_s0 = inlined_call_operand.vmem [shape: f32[64,8], index: 0, kind: input, shape index: {}]   ;;  %s1147_s3 = inlined_call_operand.vmem [shape: f32[1,128], index: 3, kind: input, shape index: {}]   ;;  %s1148_s6 = inlined_call_operand.vmem [shape: bf16[3,32], index: 6, kind: input, shape index: {}]   ;;  %s1149_s4 = inlined_call_operand.vmem [shape: bf16[128,64], index: 4, kind: input, shape index: {}]   ;;  %s1150_s1 = inlined_call_operand.vmem [shape: f32[64,3], index: 1, kind: input, shape index: {}]   ;;  %s1151_s7 = inlined_call_operand.vmem [shape: f32[1,32], index: 7, kind: input, shape index: {}]   ;;  %s1152_s5 = inlined_call_operand.vmem [shape: f32[1,64], index: 5, kind: input, shape index: {}]   ;;  %s1153_s9 = inlined_call_operand.vmem [shape: bf16[32,128], index: 9, kind: input, shape index: {}]   ;;  %s1154_s8 = inlined_call_operand.vmem [shape: bf16[64,128], index: 8, kind: input, shape index: {}]   ;;  %s1155_s10 = inlined_call_operand.vmem [shape: f32[1,128], index: 10, kind: input, shape index: {}]   ;;  %s1156_s11 = inlined_call_operand.vmem [shape: bf16[128,128], index: 11, kind: input, shape index: {}]   ;;  %s1157_s12 = inlined_call_operand.vmem [shape: f32[1,128], index: 12, kind: input, shape index: {}]   ;;  %s1158_s13 = inlined_call_operand.vmem [shape: bf16[128,8], index: 13, kind: input, shape index: {}]   ;;  %s1159_s14 = inlined_call_operand.vmem [shape: f32[1,8], index: 14, kind: input, shape index: {}]   ;;  %s1160_s15 = inlined_call_operand.vmem [shape: f32[64,8], index: 15, kind: output, shape index: {}]  }
   0x1   :  { %v75_v0 = vld [vmem:[%s1145_s2] sm:$0xf]  ;;  %v52_v2 = vld [vmem:[%s1146_s0 + $0x8] sm:$0xff]  ;;  %v53_v5 = vld [vmem:[%s1146_s0 + $0x10] sm:$0xff]  ;;  %v854_v10 = vmov 65535   ;;  %vm244_vm4 = vcmask 23552  }
   0x2   :  { %v51_v1 = vld [vmem:[%s1146_s0] sm:$0xff]  ;;  %v95_v3 = vsel %vm93_vm0, %v75_v0, 0  ;;  %v54_v6 = vld [vmem:[%s1146_s0 + $0x18] sm:$0xff]  ;;  %v259_v11 = vsel %vm257_vm2, 4294967295, %v854_v10  ;;  %v64_v13 = vld [vmem:[%s1150_s1 + $0x8] sm:$0xff]  ;;  %vm329_vm5 = vcmask 261120  }
   0x3   :  { %v59_v4 = vpack.c.bf16 %v52_v2, %v51_v1  ;;  %104 = vmatpush.bf16.msra.mxu0 %v95_v3  ;;  %v60_v7 = vpack.c.bf16 %v54_v6, %v53_v5  ;;  %v239_v8 = vld [vmem:[%s1148_s6] sm:$0x3]  ;;  %v822_v9 = vld [vmem:[%s1149_s4 + $0x38] sm:$0xff]  ;;  %v260_v14 = vsel %vm258_vm3, %v259_v11, 0  ;;  %v821_v15 = vld [vmem:[%s1149_s4 + $0x30] sm:$0xff]  ;;  %vm395_vm6 = vcmask 523264  }
   0x4   :  { %v63_v12 = vld [vmem:[%s1150_s1] sm:$0xff]  ;;  %206 = vmatpush.bf16.msra.mxu1 %v822_v9  ;;  %v262_v16 = vand.u32 %v260_v14, %v239_v8  ;;  %v820_v18 = vld [vmem:[%s1149_s4 + $0x28] sm:$0xff]  ;;  %v57_v23 = vld [vmem:[%s1146_s0 + $0x30] sm:$0xff] }
   0x5   :  { %v71_v17 = vpack.c.bf16 %v64_v13, %v63_v12  ;;  %v55_v19 = vld [vmem:[%s1146_s0 + $0x20] sm:$0xff]  ;;  %v56_v20 = vld [vmem:[%s1146_s0 + $0x28] sm:$0xff]  ;;  %v58_v24 = vld [vmem:[%s1146_s0 + $0x38] sm:$0xff] }
   0x6   :  { %679 = vmatmul.msk.bf16.vlgmr.msra.gmra.mxu0 %vm80_vm1, %v59_v4  ;;  %271 = vmatpush.bf16.msra.mxu2 %v262_v16  ;;  %v819_v21 = vld [vmem:[%s1149_s4 + $0x20] sm:$0xff]  ;;  %v61_v22 = vpack.c.bf16 %v56_v20, %v55_v19  ;;  %v62_v25 = vpack.c.bf16 %v58_v24, %v57_v23  ;;  %v818_v26 = vld [vmem:[%s1149_s4 + $0x18] sm:$0xff]  ;;  %v65_v27 = vld [vmem:[%s1150_s1 + $0x10] sm:$0xff] }
   0x7   :  { %v66_v28 = vld [vmem:[%s1150_s1 + $0x18] sm:$0xff]  ;;  %v817_v30 = vld [vmem:[%s1149_s4 + $0x10] sm:$0xff]  ;;  %v816_v31 = vld [vmem:[%s1149_s4 + $0x8] sm:$0xff] }
   0x8   :  { %207 = vmatpush.bf16.msra.mxu1 %v821_v15  ;;  %v72_v29 = vpack.c.bf16 %v66_v28, %v65_v27  ;;  %v815_v32 = vld [vmem:[%s1149_s4] sm:$0xff]  ;;  %v68_v34 = vld [vmem:[%s1150_s1 + $0x28] sm:$0xff]  ;;  %v69_v36 = vld [vmem:[%s1150_s1 + $0x30] sm:$0xff] }
   0x9   :  { %715 = vmatmul.msk.bf16.vlgmr.msra.gmra.mxu2 %vm244_vm4, %v71_v17  ;;  %v67_v33 = vld [vmem:[%s1150_s1 + $0x20] sm:$0xff]  ;;  %v70_v37 = vld [vmem:[%s1150_s1 + $0x38] sm:$0xff]  ;;  %v828_v54 = vld [vmem:[%s1153_s9 + $0x8] sm:$0xff] }
   0xa   :  { %v73_v35 = vpack.c.bf16 %v68_v34, %v67_v33  ;;  %v74_v38 = vpack.c.bf16 %v70_v37, %v69_v36  ;;  %v848_v40 = vld [vmem:[%s1147_s3] ss:$0 sm:$0xff]  ;;  %v826_v55 = vld [vmem:[%s1154_s8 + $0x18] sm:$0xff]  ;;  %v825_v57 = vld [vmem:[%s1154_s8 + $0x10] sm:$0xff]  ;;  %845 = vmatpush.bf16.msra.mxu3 %v828_v54 }
   0xb   :  { %412 = vmatpush.bf16.msrb.mxu0 %v826_v55  ;;  %v827_v58 = vld [vmem:[%s1153_s9] sm:$0xff]  ;;  %v824_v59 = vld [vmem:[%s1154_s8 + $0x8] sm:$0xff] }
   0xc   :  { %208 = vmatpush.bf16.msra.mxu1 %v820_v18  ;;  %v849_v10 = vld [vmem:[%s1151_s7] ss:$0 sm:$0xff] }
   0xd   :  { %v823_v16 = vld [vmem:[%s1154_s8] sm:$0xff] }
   0xe   :  { %846 = vmatpush.bf16.msra.mxu3 %v827_v58 }
   0xf   :  { %413 = vmatpush.bf16.msrb.mxu0 %v825_v57 }
  0x10   :  { %209 = vmatpush.bf16.msra.mxu1 %v819_v21 }
  0x13   :  { %414 = vmatpush.bf16.msrb.mxu0 %v824_v59  ;;  %v832_v59 = vld [vmem:[%s1156_s11 + $0x18] sm:$0xff] }
  0x14   :  { %210 = vmatpush.bf16.msra.mxu1 %v818_v26 }
  0x16   :  { %680 = vmatmul.msk.bf16.gmra.mxu0 %vm80_vm1, %v60_v7 }
  0x17   :  { %415 = vmatpush.bf16.msrb.mxu0 %v823_v16 }
  0x18   :  { %211 = vmatpush.bf16.msra.mxu1 %v817_v30 }
  0x19   :  { %716 = vmatmul.msk.bf16.gmra.mxu2 %vm244_vm4, %v72_v29 }
  0x1c   :  { %212 = vmatpush.bf16.msra.mxu1 %v816_v31 }
  0x20   :  { %213 = vmatpush.bf16.msra.mxu1 %v815_v32 }
  0x24   :  { %348 = vmatpush.bf16.msrb.mxu1 %v828_v54  ;;  %v833_v54 = vld [vmem:[%s1156_s11 + $0x20] sm:$0xff] }
  0x26   :  { %681 = vmatmul.msk.bf16.gmra.mxu0 %vm80_vm1, %v61_v22 }
  0x28   :  { %349 = vmatpush.bf16.msrb.mxu1 %v827_v58 }
  0x29   :  { %717 = vmatmul.msk.bf16.gmra.mxu2 %vm244_vm4, %v73_v35 }
  0x36   :  { %682 = vmatmul.msk.bf16.gmra.mxu0 %vm80_vm1, %v62_v25 }
  0x39   :  { %718 = vmatmul.msk.bf16.gmra.mxu2 %vm244_vm4, %v74_v38 }
  0x83   :  { %v106_v39 = vpop.f32.mrf.mxu0 }
  0x84   :  { %v107_v41 = vadd.f32 %v848_v40, %v106_v39  ;;  %v850_v39 = vld [vmem:[%s1152_s5] ss:$0 sm:$0xff] }
  0x86   :  { %v126_v44 = vmax.f32 %v107_v41, 0.0 }
  0x8b   :  { %v108_v42 = vpop.f32.mrf.mxu0 }
  0x8c   :  { %v109_v43 = vadd.f32 %v848_v40, %v108_v42  ;;  %v273_v3 = vpop.f32.mrf.mxu2 }
  0x8d   :  { %v274_v12 = vadd.f32 %v849_v10, %v273_v3  ;;  %v829_v3 = vld [vmem:[%s1156_s11] sm:$0xff] }
  0x8e   :  { %v127_v45 = vmax.f32 %v109_v43, 0.0 }
  0x8f   :  { %v293_v14 = vmax.f32 %v274_v12, 0.0 }
  0x90   :  { %v134_v46 = vpack.c.bf16 %v127_v45, %v126_v44 }
  0x92   :  { %214 = vmatmul.bf16.vlgmr.msra.gmra.mxu1 %v134_v46 }
  0x93   :  { %v111_v47 = vpop.f32.mrf.mxu0 }
  0x94   :  { %v112_v48 = vadd.f32 %v848_v40, %v111_v47  ;;  %v275_v11 = vpop.f32.mrf.mxu2 }
  0x95   :  { %v276_v13 = vadd.f32 %v849_v10, %v275_v11 }
  0x96   :  { %v128_v51 = vmax.f32 %v112_v48, 0.0 }
  0x97   :  { %v294_v15 = vmax.f32 %v276_v13, 0.0 }
  0x99   :  { %v301_v17 = vpack.c.bf16 %v294_v15, %v293_v14 }
  0x9b   :  { %v113_v49 = vpop.f32.mrf.mxu0 }
  0x9c   :  { %v114_v50 = vadd.f32 %v848_v40, %v113_v49  ;;  %v278_v18 = vpop.f32.mrf.mxu2 }
  0x9d   :  { %v279_v19 = vadd.f32 %v849_v10, %v278_v18 }
  0x9e   :  { %v129_v52 = vmax.f32 %v114_v50, 0.0  ;;  %v836_v50 = vld [vmem:[%s1156_s11 + $0x38] sm:$0xff] }
  0x9f   :  { %v295_v21 = vmax.f32 %v279_v19, 0.0  ;;  %529 = vmatpush.bf16.msrb.mxu2 %v836_v50 }
  0xa0   :  { %v135_v53 = vpack.c.bf16 %v129_v52, %v128_v51  ;;  %v835_v51 = vld [vmem:[%s1156_s11 + $0x30] sm:$0xff] }
  0xa2   :  { %219 = vmatmul.bf16.gmra.mxu1 %v135_v53  ;;  %v834_v53 = vld [vmem:[%s1156_s11 + $0x28] sm:$0xff] }
  0xa3   :  { %v116_v56 = vpop.f32.mrf.mxu0  ;;  %530 = vmatpush.bf16.msrb.mxu2 %v835_v51 }
  0xa4   :  { %v117_v60 = vadd.f32 %v848_v40, %v116_v56  ;;  %v280_v20 = vpop.f32.mrf.mxu2 }
  0xa5   :  { %v281_v22 = vadd.f32 %v849_v10, %v280_v20 }
  0xa6   :  { %v130_v63 = vmax.f32 %v117_v60, 0.0  ;;  %v831_v60 = vld [vmem:[%s1156_s11 + $0x10] sm:$0xff] }
  0xa7   :  { %v296_v23 = vmax.f32 %v281_v22, 0.0  ;;  %531 = vmatpush.bf16.msrb.mxu2 %v834_v53 }
  0xa9   :  { %v302_v24 = vpack.c.bf16 %v296_v23, %v295_v21 }
  0xab   :  { %v118_v61 = vpop.f32.mrf.mxu0  ;;  %532 = vmatpush.bf16.msrb.mxu2 %v833_v54  ;;  %v839_v54 = vld [vmem:[%s1158_s13 + $0x10] sm:$0xff] }
  0xac   :  { %v119_v62 = vadd.f32 %v848_v40, %v118_v61  ;;  %v283_v25 = vpop.f32.mrf.mxu2 }
  0xad   :  { %v284_v26 = vadd.f32 %v849_v10, %v283_v25 }
  0xae   :  { %v131_v0 = vmax.f32 %v119_v62, 0.0 }
  0xaf   :  { %v297_v28 = vmax.f32 %v284_v26, 0.0  ;;  %533 = vmatpush.bf16.msrb.mxu2 %v832_v59 }
  0xb0   :  { %v136_v1 = vpack.c.bf16 %v131_v0, %v130_v63 }
  0xb2   :  { %224 = vmatmul.bf16.gmra.mxu1 %v136_v1 }
  0xb3   :  { %v121_v2 = vpop.f32.mrf.mxu0  ;;  %534 = vmatpush.bf16.msrb.mxu2 %v831_v60 }
  0xb4   :  { %v122_v4 = vadd.f32 %v848_v40, %v121_v2  ;;  %v285_v27 = vpop.f32.mrf.mxu2  ;;  %v830_v2 = vld [vmem:[%s1156_s11 + $0x8] sm:$0xff] }
  0xb5   :  { %v286_v29 = vadd.f32 %v849_v10, %v285_v27 }
  0xb6   :  { %v132_v7 = vmax.f32 %v122_v4, 0.0 }
  0xb7   :  { %v298_v30 = vmax.f32 %v286_v29, 0.0  ;;  %535 = vmatpush.bf16.msrb.mxu2 %v830_v2  ;;  %v844_v29 = vld [vmem:[%s1158_s13 + $0x38] sm:$0xff] }
  0xb8   :  { %638 = vmatpush.bf16.msrb.mxu3 %v844_v29 }
  0xb9   :  { %v303_v31 = vpack.c.bf16 %v298_v30, %v297_v28  ;;  %v843_v30 = vld [vmem:[%s1158_s13 + $0x30] sm:$0xff] }
  0xbb   :  { %v123_v5 = vpop.f32.mrf.mxu0  ;;  %729 = vmatmul.msk.bf16.vlgmr.msra.gmra.mxu3 %vm329_vm5, %v303_v31  ;;  %536 = vmatpush.bf16.msrb.mxu2 %v829_v3 }
  0xbc   :  { %v124_v6 = vadd.f32 %v848_v40, %v123_v5  ;;  %v288_v32 = vpop.f32.mrf.mxu2  ;;  %639 = vmatpush.bf16.msrb.mxu3 %v843_v30 }
  0xbd   :  { %v289_v33 = vadd.f32 %v849_v10, %v288_v32 }
  0xbe   :  { %v133_v8 = vmax.f32 %v124_v6, 0.0 }
  0xbf   :  { %v299_v36 = vmax.f32 %v289_v33, 0.0  ;;  %v842_v33 = vld [vmem:[%s1158_s13 + $0x28] sm:$0xff] }
  0xc0   :  { %v137_v9 = vpack.c.bf16 %v133_v8, %v132_v7  ;;  %v851_v8 = vld [vmem:[%s1155_s10] ss:$0 sm:$0xff]  ;;  %640 = vmatpush.bf16.msrb.mxu3 %v842_v33 }
  0xc2   :  { %229 = vmatmul.bf16.gmra.mxu1 %v137_v9 }
  0xc4   :  { %v290_v35 = vpop.f32.mrf.mxu2 }
  0xc5   :  { %v291_v37 = vadd.f32 %v849_v10, %v290_v35 }
  0xc7   :  { %v300_v38 = vmax.f32 %v291_v37, 0.0 }
  0xc9   :  { %v304_v40 = vpack.c.bf16 %v300_v38, %v299_v36  ;;  %v841_v38 = vld [vmem:[%s1158_s13 + $0x20] sm:$0xff] }
  0xca   :  { %641 = vmatpush.bf16.msrb.mxu3 %v841_v38 }
  0xcb   :  { %730 = vmatmul.msk.bf16.gmra.mxu3 %vm329_vm5, %v304_v40 }
  0xd2   :  { %727 = vmatmul.msk.bf16.vlgmr.msrb.gmra.mxu1 %vm329_vm5, %v301_v17 }
  0xe2   :  { %728 = vmatmul.msk.bf16.gmra.mxu1 %vm329_vm5, %v302_v24 }
 0x10f   :  { %v215_v34 = vpop.f32.mrf.mxu1 }
 0x110   :  { %v216_v42 = vadd.f32 %v850_v39, %v215_v34 }
 0x117   :  { %v217_v41 = vpop.f32.mrf.mxu1 }
 0x118   :  { %v218_v43 = vadd.f32 %v850_v39, %v217_v41 }
 0x11a   :  { %v235_v44 = vpack.c.bf16 %v218_v43, %v216_v42  ;;  %v840_v43 = vld [vmem:[%s1158_s13 + $0x18] sm:$0xff] }
 0x11b   :  { %642 = vmatpush.bf16.msrb.mxu3 %v840_v43 }
 0x11c   :  { %747 = vmatmul.msk.bf16.vlgmr.msrb.gmra.mxu0 %vm395_vm6, %v235_v44 }
 0x11f   :  { %v220_v45 = vpop.f32.mrf.mxu1  ;;  %643 = vmatpush.bf16.msrb.mxu3 %v839_v54 }
 0x120   :  { %v221_v47 = vadd.f32 %v850_v39, %v220_v45 }
 0x127   :  { %v222_v46 = vpop.f32.mrf.mxu1 }
 0x128   :  { %v223_v48 = vadd.f32 %v850_v39, %v222_v46 }
 0x12a   :  { %v236_v49 = vpack.c.bf16 %v223_v48, %v221_v47 }
 0x12c   :  { %748 = vmatmul.msk.bf16.gmra.mxu0 %vm395_vm6, %v236_v49 }
 0x12f   :  { %v225_v52 = vpop.f32.mrf.mxu1 }
 0x130   :  { %v226_v56 = vadd.f32 %v850_v39, %v225_v52 }
 0x137   :  { %v227_v55 = vpop.f32.mrf.mxu1 }
 0x138   :  { %v228_v57 = vadd.f32 %v850_v39, %v227_v55  ;;  %v838_v55 = vld [vmem:[%s1158_s13 + $0x8] sm:$0xff] }
 0x139   :  { %644 = vmatpush.bf16.msrb.mxu3 %v838_v55 }
 0x13a   :  { %v237_v58 = vpack.c.bf16 %v228_v57, %v226_v56  ;;  %v837_v56 = vld [vmem:[%s1158_s13] sm:$0xff] }
 0x13c   :  { %749 = vmatmul.msk.bf16.gmra.mxu0 %vm395_vm6, %v237_v58  ;;  %v852_v58 = vld [vmem:[%s1157_s12] ss:$0 sm:$0xff] }
 0x13d   :  { %645 = vmatpush.bf16.msrb.mxu3 %v837_v56 }
 0x13e   :  { %v361_v23 = vpop.f32.mrf.mxu3 }
 0x13f   :  { %v230_v61 = vpop.f32.mrf.mxu1 }
 0x140   :  { %v231_v63 = vadd.f32 %v850_v39, %v230_v61 }
 0x146   :  { %v363_v31 = vpop.f32.mrf.mxu3 }
 0x147   :  { %v232_v62 = vpop.f32.mrf.mxu1 }
 0x148   :  { %v233_v0 = vadd.f32 %v850_v39, %v232_v62 }
 0x14a   :  { %v238_v1 = vpack.c.bf16 %v233_v0, %v231_v63 }
 0x14c   :  { %750 = vmatmul.msk.bf16.gmra.mxu0 %vm395_vm6, %v238_v1 }
 0x14e   :  { %v366_v41 = vpop.f32.mrf.mxu3 }
 0x14f   :  { %v351_v4 = vpop.f32.mrf.mxu1 }
 0x156   :  { %v368_v46 = vpop.f32.mrf.mxu3 }
 0x157   :  { %v353_v6 = vpop.f32.mrf.mxu1 }
 0x15f   :  { %v356_v15 = vpop.f32.mrf.mxu1 }
 0x167   :  { %v358_v19 = vpop.f32.mrf.mxu1 }
 0x199   :  { %v417_v5 = vpop.f32.mrf.mxu0 }
 0x19a   :  { %v418_v7 = vadd.f32 %v417_v5, %v351_v4 }
 0x19c   :  { %v441_v10 = vadd.f32 %v851_v8, %v418_v7 }
 0x19e   :  { %v449_v13 = vmax.f32 %v441_v10, 0.0 }
 0x1a1   :  { %v419_v9 = vpop.f32.mrf.mxu0 }
 0x1a2   :  { %v420_v11 = vadd.f32 %v419_v9, %v353_v6 }
 0x1a4   :  { %v442_v12 = vadd.f32 %v851_v8, %v420_v11 }
 0x1a6   :  { %v450_v14 = vmax.f32 %v442_v12, 0.0 }
 0x1a8   :  { %v457_v16 = vpack.c.bf16 %v450_v14, %v449_v13 }
 0x1a9   :  { %v422_v17 = vpop.f32.mrf.mxu0 }
 0x1aa   :  { %537 = vmatmul.bf16.vlgmr.msrb.gmra.mxu2 %v457_v16  ;;  %v423_v18 = vadd.f32 %v422_v17, %v356_v15 }
 0x1ac   :  { %v443_v21 = vadd.f32 %v851_v8, %v423_v18 }
 0x1ae   :  { %v451_v25 = vmax.f32 %v443_v21, 0.0 }
 0x1b1   :  { %v424_v20 = vpop.f32.mrf.mxu0 }
 0x1b2   :  { %v425_v22 = vadd.f32 %v424_v20, %v358_v19 }
 0x1b4   :  { %v444_v24 = vadd.f32 %v851_v8, %v425_v22  ;;  %v853_v22 = vld [vmem:[%s1159_s14] ss:$0 sm:$0xff] }
 0x1b6   :  { %v452_v26 = vmax.f32 %v444_v24, 0.0 }
 0x1b8   :  { %v458_v27 = vpack.c.bf16 %v452_v26, %v451_v25 }
 0x1b9   :  { %v427_v28 = vpop.f32.mrf.mxu0 }
 0x1ba   :  { %542 = vmatmul.bf16.gmra.mxu2 %v458_v27  ;;  %v428_v32 = vadd.f32 %v427_v28, %v361_v23 }
 0x1bc   :  { %v445_v35 = vadd.f32 %v851_v8, %v428_v32 }
 0x1be   :  { %v453_v39 = vmax.f32 %v445_v35, 0.0 }
 0x1c1   :  { %v429_v34 = vpop.f32.mrf.mxu0 }
 0x1c2   :  { %v430_v36 = vadd.f32 %v429_v34, %v363_v31 }
 0x1c4   :  { %v446_v37 = vadd.f32 %v851_v8, %v430_v36 }
 0x1c6   :  { %v454_v40 = vmax.f32 %v446_v37, 0.0 }
 0x1c8   :  { %v459_v42 = vpack.c.bf16 %v454_v40, %v453_v39 }
 0x1c9   :  { %v432_v44 = vpop.f32.mrf.mxu0 }
 0x1ca   :  { %547 = vmatmul.bf16.gmra.mxu2 %v459_v42  ;;  %v433_v45 = vadd.f32 %v432_v44, %v366_v41 }
 0x1cc   :  { %v447_v48 = vadd.f32 %v851_v8, %v433_v45 }
 0x1ce   :  { %v455_v51 = vmax.f32 %v447_v48, 0.0 }
 0x1d1   :  { %v434_v47 = vpop.f32.mrf.mxu0 }
 0x1d2   :  { %v435_v49 = vadd.f32 %v434_v47, %v368_v46 }
 0x1d4   :  { %v448_v50 = vadd.f32 %v851_v8, %v435_v49 }
 0x1d6   :  { %v456_v52 = vmax.f32 %v448_v50, 0.0 }
 0x1d8   :  { %v460_v53 = vpack.c.bf16 %v456_v52, %v455_v51 }
 0x1da   :  { %552 = vmatmul.bf16.gmra.mxu2 %v460_v53 }
 0x22d   :  { %v538_v57 = vpop.f32.mrf.mxu2 }
 0x22e   :  { %v539_v59 = vadd.f32 %v852_v58, %v538_v57 }
 0x230   :  { %v558_v62 = vmax.f32 %v539_v59, 0.0 }
 0x235   :  { %v540_v60 = vpop.f32.mrf.mxu2 }
 0x236   :  { %v541_v61 = vadd.f32 %v852_v58, %v540_v60 }
 0x238   :  { %v559_v63 = vmax.f32 %v541_v61, 0.0 }
 0x23a   :  { %v566_v0 = vpack.c.bf16 %v559_v63, %v558_v62 }
 0x23c   :  { %646 = vmatmul.bf16.vlgmr.msrb.gmra.mxu3 %v566_v0 }
 0x23d   :  { %v543_v1 = vpop.f32.mrf.mxu2 }
 0x23e   :  { %v544_v2 = vadd.f32 %v852_v58, %v543_v1 }
 0x240   :  { %v560_v5 = vmax.f32 %v544_v2, 0.0 }
 0x245   :  { %v545_v3 = vpop.f32.mrf.mxu2 }
 0x246   :  { %v546_v4 = vadd.f32 %v852_v58, %v545_v3 }
 0x248   :  { %v561_v6 = vmax.f32 %v546_v4, 0.0 }
 0x24a   :  { %v567_v7 = vpack.c.bf16 %v561_v6, %v560_v5 }
 0x24c   :  { %651 = vmatmul.bf16.gmra.mxu3 %v567_v7 }
 0x24d   :  { %v548_v8 = vpop.f32.mrf.mxu2 }
 0x24e   :  { %v549_v9 = vadd.f32 %v852_v58, %v548_v8 }
 0x250   :  { %v562_v12 = vmax.f32 %v549_v9, 0.0 }
 0x255   :  { %v550_v10 = vpop.f32.mrf.mxu2 }
 0x256   :  { %v551_v11 = vadd.f32 %v852_v58, %v550_v10 }
 0x258   :  { %v563_v13 = vmax.f32 %v551_v11, 0.0 }
 0x25a   :  { %v568_v14 = vpack.c.bf16 %v563_v13, %v562_v12 }
 0x25c   :  { %656 = vmatmul.bf16.gmra.mxu3 %v568_v14 }
 0x25d   :  { %v553_v15 = vpop.f32.mrf.mxu2 }
 0x25e   :  { %v554_v16 = vadd.f32 %v852_v58, %v553_v15 }
 0x260   :  { %v564_v19 = vmax.f32 %v554_v16, 0.0 }
 0x265   :  { %v555_v17 = vpop.f32.mrf.mxu2 }
 0x266   :  { %v556_v18 = vadd.f32 %v852_v58, %v555_v17 }
 0x268   :  { %v565_v20 = vmax.f32 %v556_v18, 0.0 }
 0x26a   :  { %v569_v21 = vpack.c.bf16 %v565_v20, %v564_v19 }
 0x26c   :  { %661 = vmatmul.bf16.gmra.mxu3 %v569_v21 }
 0x2bf   :  { %v647_v23 = vpop.f32.mrf.mxu3 }
 0x2c0   :  { %v648_v24 = vadd.f32 %v853_v22, %v647_v23 }
 0x2c2   :  { %667 = vst.msk [vmem:[%s1160_s15] sm:$0xff] %vm80_vm1, %v648_v24 }
 0x2c7   :  { %v649_v25 = vpop.f32.mrf.mxu3 }
 0x2c8   :  { %v650_v26 = vadd.f32 %v853_v22, %v649_v25 }
 0x2ca   :  { %668 = vst.msk [vmem:[%s1160_s15 + $0x8] sm:$0xff] %vm80_vm1, %v650_v26 }
 0x2cf   :  { %v652_v27 = vpop.f32.mrf.mxu3 }
 0x2d0   :  { %v653_v28 = vadd.f32 %v853_v22, %v652_v27 }
 0x2d2   :  { %669 = vst.msk [vmem:[%s1160_s15 + $0x10] sm:$0xff] %vm80_vm1, %v653_v28 }
 0x2d7   :  { %v654_v29 = vpop.f32.mrf.mxu3 }
 0x2d8   :  { %v655_v30 = vadd.f32 %v853_v22, %v654_v29 }
 0x2da   :  { %670 = vst.msk [vmem:[%s1160_s15 + $0x18] sm:$0xff] %vm80_vm1, %v655_v30 }
 0x2df   :  { %v657_v31 = vpop.f32.mrf.mxu3 }
 0x2e0   :  { %v658_v32 = vadd.f32 %v853_v22, %v657_v31 }
 0x2e2   :  { %671 = vst.msk [vmem:[%s1160_s15 + $0x20] sm:$0xff] %vm80_vm1, %v658_v32 }
 0x2e7   :  { %v659_v33 = vpop.f32.mrf.mxu3 }
 0x2e8   :  { %v660_v34 = vadd.f32 %v853_v22, %v659_v33 }
 0x2ea   :  { %672 = vst.msk [vmem:[%s1160_s15 + $0x28] sm:$0xff] %vm80_vm1, %v660_v34 }
 0x2ef   :  { %v662_v35 = vpop.f32.mrf.mxu3 }
 0x2f0   :  { %v663_v36 = vadd.f32 %v853_v22, %v662_v35 }
 0x2f2   :  { %673 = vst.msk [vmem:[%s1160_s15 + $0x30] sm:$0xff] %vm80_vm1, %v663_v36 }
 0x2f7   :  { %v664_v37 = vpop.f32.mrf.mxu3 }
 0x2f8   :  { %v665_v38 = vadd.f32 %v853_v22, %v664_v37 }
 0x2fa   :  { %674 = vst.msk [vmem:[%s1160_s15 + $0x38] sm:$0xff] %vm80_vm1, %v665_v38 }

</bundles_post_ra>
